<compile_context>
chip_gen: v6e
topology: v6e:2x2x1
jax: 0.10.0
libtpu: 0.0.40
codegen_flags: <defaults>
</compile_context>

<pallas_src>
import jax
import jax.numpy as jnp
from jax import lax
from jax.experimental import pallas as pl
from jax.experimental.pallas import tpu as pltpu

_HIDDEN_PAD = 128                      # lane padding of the 50-wide hidden
_VMEM_TILE_BUDGET = 42 * 1024 * 1024   # bytes of VMEM the tile sizing targets
_VMEM_LIMIT_BYTES = 56 * 1024 * 1024   # explicit scoped-VMEM limit (< v7x 64 MiB phys)
_MAX_TILE_B = 16384                    # amortization cap (review: ~8-16k on v7x)


def _resnet_dis_kernel(x_ref, w1_ref, b1_ref, w2_ref, b2_ref, o_ref):
    # fc1 on the MXU: [tile_b, emb] @ [emb, 50], f32 accumulate. Inputs are
    # consumed in their native dtype (bf16 feeds the MXU directly).
    h = jnp.dot(x_ref[...], w1_ref[...], preferred_element_type=jnp.float32)
    h = jnp.maximum(h + b1_ref[...], 0.0)            # bias + relu (f32, VPU)

    # TODO(synk): training-mode F.dropout would need pltpu.prng_seed /
    # pltpu.prng_random_bits masking; this implements the eval (identity) path.

    # fc2 fused with the column->row relayout: contract the hidden axis of
    # w2_row [1, 50] against the hidden axis of h [tile_b, 50] (the q @ k.T
    # pattern) -> lane-dense z of shape [1, tile_b].  The whole epilogue and
    # the output store are then dense along the lane axis.
    z = lax.dot_general(w2_ref[...], h, (((1,), (1,)), ((), ())),
                        preferred_element_type=jnp.float32)
    z = z + b2_ref[...]                               # [1, tile_b] + [1, 1]

    # sigmoid: exp and approx reciprocal both land on the EUP slot, now on
    # dense lanes (one EUP push per 128 rows instead of per 8 rows).
    y = pl.reciprocal(1.0 + jnp.exp(-z), approx=True)

    # Lane-dense unmasked store of a (1, tile_b) slab.
    o_ref[...] = y.astype(o_ref.dtype)


def _pick_tile_b(batch, emb_dim, x_itemsize):
    """Size the batch tile against an honest VMEM budget.

    Per grid step:
      x double-buffer:   2 * tile_b * emb_dim * itemsize
      f32 h (50 lanes padded to 128): tile_b * 128 * 4
      output double-buffer (1, tile_b): 2 * tile_b * itemsize
    Resident across steps: w1 (double-buffered, lane-padded) + tiny biases.
    """
    resident = 2 * emb_dim * _HIDDEN_PAD * 4 + 4 * _HIDDEN_PAD * 4
    avail = max(_VMEM_TILE_BUDGET - resident, 1 << 20)
    per_row = (2 * emb_dim * x_itemsize     # streamed x, double-buffered
               + _HIDDEN_PAD * 4            # f32 hidden intermediate
               + 2 * x_itemsize)            # lane-dense output, double-buffered
    t = int(avail // per_row)
    t = min(t, _MAX_TILE_B, batch)

    if t >= batch:
        t = batch
        # Ensure the "parallel" batch axis has >= 2 grid steps when each half
        # still carries >= ~1024 rows, so v7x's second TensorCore isn't idle.
        if batch >= 2048:
            t = ((batch + 1) // 2 // 128) * 128

    if t < batch:
        # Tiled path: the lane-dense (1, tile_b) output block requires
        # tile_b % 128 == 0 (also covers the bf16 16-sublane packing rule).
        t = max(128, (t // 128) * 128)
        if t >= batch:
            t = batch
    return int(t)


def resnet_dis_forward(x, w1, b1, w2, b2, *, tile_b=None):
    """x: [B, embDim]; w1: [embDim, 50]; b1: [*, 50]; w2: [50, 1]; b2: [*, 1]."""
    B, emb_dim = x.shape
    hidden = w1.shape[1]

    # Tiny parameters stay f32 (v5e has no bf16 VPU/EUP); w2 as a [1, 50] row.
    w2_row = w2.reshape(1, hidden).astype(jnp.float32)
    b1_row = b1.reshape(1, hidden).astype(jnp.float32)
    b2_s = b2.reshape(1, 1).astype(jnp.float32)

    if tile_b is None:
        tile_b = _pick_tile_b(B, emb_dim, x.dtype.itemsize)
    else:
        tile_b = min(int(tile_b), B)
        if tile_b < B:
            tile_b = max(128, (tile_b // 128) * 128)   # lane-dense output block
            tile_b = min(tile_b, B)

    grid = (pl.cdiv(B, tile_b),)

    flops = 2 * B * emb_dim * hidden + 2 * B * hidden + 4 * B
    bytes_accessed = (x.size * x.dtype.itemsize
                      + w1.size * w1.dtype.itemsize
                      + (2 * hidden + 2) * 4
                      + B * x.dtype.itemsize)

    out = pl.pallas_call(
        _resnet_dis_kernel,
        out_shape=jax.ShapeDtypeStruct((1, B), x.dtype),
        grid=grid,
        in_specs=[
            pl.BlockSpec((tile_b, emb_dim), lambda i: (i, 0)),   # x: streamed
            pl.BlockSpec((emb_dim, hidden), lambda i: (0, 0)),   # w1: resident
            pl.BlockSpec((1, hidden), lambda i: (0, 0)),         # b1: resident
            pl.BlockSpec((1, hidden), lambda i: (0, 0)),         # w2 row: resident
            pl.BlockSpec((1, 1), lambda i: (0, 0)),              # b2: resident
        ],
        out_specs=pl.BlockSpec((1, tile_b), lambda i: (0, i)),   # lane-dense slab
        compiler_params=pltpu.CompilerParams(
            dimension_semantics=("parallel",),        # batch over v7x's 2 TCs
            vmem_limit_bytes=_VMEM_LIMIT_BYTES),      # honest, explicit budget
        cost_estimate=pl.CostEstimate(
            flops=flops, transcendentals=2 * B, bytes_accessed=bytes_accessed),
    )(x, w1, b1_row, w2_row, b2_s)

    return out.reshape(B, 1)


def init_params(key, emb_dim, hidden=50, out_dim=1, dtype=jnp.float32):
    """PyTorch-Linear-style init: U(-1/sqrt(fan_in), 1/sqrt(fan_in))."""
    k1, k2, k3, k4 = jax.random.split(key, 4)
    bound1 = 1.0 / (emb_dim ** 0.5)
    bound2 = 1.0 / (hidden ** 0.5)
    w1 = jax.random.uniform(k1, (emb_dim, hidden), dtype, -bound1, bound1)
    b1 = jax.random.uniform(k2, (1, hidden), dtype, -bound1, bound1)
    w2 = jax.random.uniform(k3, (hidden, out_dim), dtype, -bound2, bound2)
    b2 = jax.random.uniform(k4, (1, out_dim), dtype, -bound2, bound2)
    return w1, b1, w2, b2


if __name__ == "__main__":
    emb_dim, hidden, batch = 64, 50, 256

    key = jax.random.PRNGKey(0)
    k_x, k_p = jax.random.split(key)
    x = jax.random.normal(k_x, (batch, emb_dim), dtype=jnp.float32)
    w1, b1, w2, b2 = init_params(k_p, emb_dim, hidden=hidden)

    # Pure-JAX reference (eval-mode dropout = identity).
    ref = jax.nn.sigmoid(jnp.maximum(x @ w1 + b1, 0.0) @ w2 + b2)

    # Auto-sized tile -> single-block path.
    out = jax.block_until_ready(resnet_dis_forward(x, w1, b1, w2, b2))
    assert out.shape == (batch, 1)
    assert jnp.allclose(out, ref, atol=2e-2)   # approx-reciprocal sigmoid

    # Explicit tile_b=128 -> 2-step batch grid (exercises the pipeline and the
    # lane-dense multi-block output path).
    out_tiled = jax.block_until_ready(
        resnet_dis_forward(x, w1, b1, w2, b2, tile_b=128))
    assert out_tiled.shape == (batch, 1)
    assert jnp.allclose(out_tiled, ref, atol=2e-2)

    # bf16-input path (halves the dominant x HBM traffic on v6e/v7x).
    out_bf16 = jax.block_until_ready(
        resnet_dis_forward(x.astype(jnp.bfloat16), w1.astype(jnp.bfloat16),
                           b1, w2, b2, tile_b=128))
    assert out_bf16.shape == (batch, 1)
    assert jnp.allclose(out_bf16.astype(jnp.float32), ref, atol=5e-2)

    print("KERNEL_OK")
</pallas_src>

<mosaic_0001>
module attributes {stable_mosaic.version = 11 : i64} {
  func.func @_resnet_dis_kernel(%arg0: i32, %arg1: memref<256x64xf32, #tpu.memory_space<vmem>>, %arg2: memref<64x50xf32, #tpu.memory_space<vmem>>, %arg3: memref<1x50xf32, #tpu.memory_space<vmem>>, %arg4: memref<1x50xf32, #tpu.memory_space<vmem>>, %arg5: memref<1x1xf32, #tpu.memory_space<vmem>>, %arg6: memref<1x256xf32, #tpu.memory_space<vmem>>) attributes {dimension_semantics = [#tpu.dimension_semantics<parallel>], iteration_bounds = array<i64: 1>, scalar_prefetch = 0 : i64, scratch_operands = 0 : i64, tpu.core_type = #tpu.core_type<tc>, window_params = [{transform_indices = @transform_0, window_bounds = array<i64: 256, 64>}, {pipeline_mode = #tpu.pipeline_mode<synchronous>, transform_indices = @transform_1, window_bounds = array<i64: 64, 50>}, {pipeline_mode = #tpu.pipeline_mode<synchronous>, transform_indices = @transform_2, window_bounds = array<i64: 1, 50>}, {pipeline_mode = #tpu.pipeline_mode<synchronous>, transform_indices = @transform_3, window_bounds = array<i64: 1, 50>}, {pipeline_mode = #tpu.pipeline_mode<synchronous>, transform_indices = @transform_4, window_bounds = array<i64: 1, 1>}, {transform_indices = @transform_5, window_bounds = array<i64: 1, 256>}]} {
    %c0 = arith.constant 0 : index
    %c0_0 = arith.constant 0 : index
    %0 = vector.load %arg1[%c0, %c0_0] : memref<256x64xf32, #tpu.memory_space<vmem>>, vector<256x64xf32>
    %c0_1 = arith.constant 0 : index
    %c0_2 = arith.constant 0 : index
    %1 = vector.load %arg2[%c0_1, %c0_2] : memref<64x50xf32, #tpu.memory_space<vmem>>, vector<64x50xf32>
    %cst = arith.constant dense<0.000000e+00> : vector<256x50xf32>
    %2 = tpu.matmul %0, %1, %cst {dimension_numbers = #tpu.dot_dimension_numbers<[1], [0], [0], [1], [0, 0, 1, 1], [], []>} : vector<256x64xf32>, vector<64x50xf32>, vector<256x50xf32> -> vector<256x50xf32>
    %c0_3 = arith.constant 0 : index
    %c0_4 = arith.constant 0 : index
    %3 = vector.load %arg3[%c0_3, %c0_4] : memref<1x50xf32, #tpu.memory_space<vmem>>, vector<1x50xf32>
    %4 = vector.broadcast %3 : vector<1x50xf32> to vector<256x50xf32>
    %5 = arith.addf %2, %4 : vector<256x50xf32>
    %cst_5 = arith.constant 0.000000e+00 : f32
    %6 = vector.broadcast %cst_5 : f32 to vector<256x50xf32>
    %7 = arith.maximumf %5, %6 : vector<256x50xf32>
    %c0_6 = arith.constant 0 : index
    %c0_7 = arith.constant 0 : index
    %8 = vector.load %arg4[%c0_6, %c0_7] : memref<1x50xf32, #tpu.memory_space<vmem>>, vector<1x50xf32>
    %cst_8 = arith.constant dense<0.000000e+00> : vector<1x256xf32>
    %9 = tpu.matmul %8, %7, %cst_8 {dimension_numbers = #tpu.dot_dimension_numbers<[1], [1], [0], [0], [0, 0, 1, 0], [], []>} : vector<1x50xf32>, vector<256x50xf32>, vector<1x256xf32> -> vector<1x256xf32>
    %c0_9 = arith.constant 0 : index
    %c0_10 = arith.constant 0 : index
    %10 = vector.load %arg5[%c0_9, %c0_10] : memref<1x1xf32, #tpu.memory_space<vmem>>, vector<1x1xf32>
    %11 = vector.broadcast %10 : vector<1x1xf32> to vector<1x256xf32>
    %12 = arith.addf %9, %11 : vector<1x256xf32>
    %cst_11 = arith.constant 0.000000e+00 : f32
    %13 = vector.broadcast %cst_11 : f32 to vector<1x256xf32>
    %14 = arith.subf %13, %12 : vector<1x256xf32>
    %15 = math.exp %14 : vector<1x256xf32>
    %cst_12 = arith.constant 1.000000e+00 : f32
    %16 = vector.broadcast %cst_12 : f32 to vector<1x256xf32>
    %17 = arith.addf %16, %15 : vector<1x256xf32>
    %18 = tpu.reciprocal %17 {approx = true} : vector<1x256xf32> -> vector<1x256xf32>
    %c0_13 = arith.constant 0 : index
    %c0_14 = arith.constant 0 : index
    %19 = vector.load %arg6[%c0_13, %c0_14] : memref<1x256xf32, #tpu.memory_space<vmem>>, vector<1x256xf32>
    tpu.vector_store %arg6[%c0_13, %c0_14], %18 {strides = array<i32>} : memref<1x256xf32, #tpu.memory_space<vmem>>, vector<1x256xf32>,
    return
  }
  func.func @transform_0(%arg0: i32) -> (i32, i32) {
    %c0_i32 = arith.constant 0 : i32
    %c0_i32_0 = arith.constant 0 : i32
    return %arg0, %c0_i32 : i32, i32
  }
  func.func @transform_1(%arg0: i32) -> (i32, i32) {
    %c0_i32 = arith.constant 0 : i32
    %c0_i32_0 = arith.constant 0 : i32
    %c0_i32_1 = arith.constant 0 : i32
    return %c0_i32, %c0_i32_0 : i32, i32
  }
  func.func @transform_2(%arg0: i32) -> (i32, i32) {
    %c0_i32 = arith.constant 0 : i32
    %c0_i32_0 = arith.constant 0 : i32
    %c0_i32_1 = arith.constant 0 : i32
    return %c0_i32, %c0_i32_0 : i32, i32
  }
  func.func @transform_3(%arg0: i32) -> (i32, i32) {
    %c0_i32 = arith.constant 0 : i32
    %c0_i32_0 = arith.constant 0 : i32
    %c0_i32_1 = arith.constant 0 : i32
    return %c0_i32, %c0_i32_0 : i32, i32
  }
  func.func @transform_4(%arg0: i32) -> (i32, i32) {
    %c0_i32 = arith.constant 0 : i32
    %c0_i32_0 = arith.constant 0 : i32
    %c0_i32_1 = arith.constant 0 : i32
    return %c0_i32, %c0_i32_0 : i32, i32
  }
  func.func @transform_5(%arg0: i32) -> (i32, i32) {
    %c0_i32 = arith.constant 0 : i32
    %c0_i32_0 = arith.constant 0 : i32
    return %c0_i32, %arg0 : i32, i32
  }
}

</mosaic_0001>

<bundles_post_ra>
// kernel: tpu_custom_call.1
= control target key start
LH: loop header
LB: loop body
LE: loop exit
PB: predicated region body
PF: predicated region fallthrough
CT: control target
= control target key end

     0   :  { %s1205_s0 = inlined_call_operand.vmem [shape: f32[256,64], index: 0, kind: input, shape index: {}]   ;;  %s1206_s1 = inlined_call_operand.vmem [shape: f32[64,50], index: 1, kind: input, shape index: {}]   ;;  %s1207_s2 = inlined_call_operand.vmem [shape: f32[1,50], index: 2, kind: input, shape index: {}]   ;;  %s1208_s3 = inlined_call_operand.vmem [shape: f32[1,50], index: 3, kind: input, shape index: {}]   ;;  %s1209_s4 = inlined_call_operand.<no memory space> [shape: f32[1,1], index: 4, kind: input, shape index: {}]   ;;  %s1210_s5 = inlined_call_operand.hbm [shape: f32[1,256], index: 5, kind: output, shape index: {}]  }
   0x1   :  { %v10_v0 = vstv %s1209_s4 }
   0x2   :  { %11 = vst [vmem:[#allocation2] sm:$0x1] %v10_v0 }
   0x3   :  { %v62_v1 = vld [vmem:[%s1206_s1 + $0x38] sm:$0xff]  ;;  %v61_v2 = vld [vmem:[%s1206_s1 + $0x30] sm:$0xff]  ;;  %vm70_vm0 = vcmask 523264   ;;  %v60_v3 = vld [vmem:[%s1206_s1 + $0x28] sm:$0xff] }
   0x4   :  { %793 = vmatprep.subr.mxu0 %v62_v1  ;;  %v23_v4 = vld [vmem:[%s1205_s0] sm:$0xff]  ;;  %v58_v6 = vld [vmem:[%s1206_s1 + $0x18] sm:$0xff]  ;;  %v57_v7 = vld [vmem:[%s1206_s1 + $0x10] sm:$0xff] }
   0x5   :  { %794 = vmatpush3.msra.mxu0 %v62_v1  ;;  %809 = vmatprep.mubr.msk.f32.mxu0 %vm70_vm0, %v23_v4  ;;  %v59_v5 = vld [vmem:[%s1206_s1 + $0x20] sm:$0xff]  ;;  %v56_v8 = vld [vmem:[%s1206_s1 + $0x8] sm:$0xff] }
   0x6   :  { %795 = vmatprep.subr.mxu0 %v61_v2  ;;  %v55_v9 = vld [vmem:[%s1206_s1] sm:$0xff] }
   0x7   :  { %796 = vmatpush3.msra.mxu0 %v61_v2 }
   0x8   :  { %797 = vmatprep.subr.mxu0 %v60_v3 }
   0x9   :  { %798 = vmatpush3.msra.mxu0 %v60_v3 }
   0xa   :  { %799 = vmatprep.subr.mxu0 %v59_v5 }
   0xb   :  { %800 = vmatpush3.msra.mxu0 %v59_v5 }
   0xc   :  { %801 = vmatprep.subr.mxu0 %v58_v6 }
   0xd   :  { %802 = vmatpush3.msra.mxu0 %v58_v6 }
   0xe   :  { %803 = vmatprep.subr.mxu0 %v57_v7 }
   0xf   :  { %804 = vmatpush3.msra.mxu0 %v57_v7 }
  0x10   :  { %805 = vmatprep.subr.mxu0 %v56_v8 }
  0x11   :  { %12 = vsyncpa [#allocation4], 0  ;;  %806 = vmatpush3.msra.mxu0 %v56_v8  ;;  %v24_v10 = vld [vmem:[%s1205_s0 + $0x8] sm:$0xff]  ;;  %v25_v11 = vld [vmem:[%s1205_s0 + $0x10] sm:$0xff]  ;;  %vm435_vm1 = vcmask 408576   ;;  %v891_v45 = vmov 0  }
  0x12   :  { %807 = vmatprep.subr.mxu0 %v55_v9  ;;  %v26_v12 = vld [vmem:[%s1205_s0 + $0x18] sm:$0xff]  ;;  %v27_v13 = vld [vmem:[%s1205_s0 + $0x20] sm:$0xff]  ;;  %v28_v14 = vld [vmem:[%s1205_s0 + $0x28] sm:$0xff]  ;;  %860 = vset.pattern.permute.xlu0 %v891_v45 }
  0x13   :  { %808 = vmatpush3.msra.mxu0 %v55_v9  ;;  %v29_v15 = vld [vmem:[%s1205_s0 + $0x30] sm:$0xff]  ;;  %v30_v16 = vld [vmem:[%s1205_s0 + $0x38] sm:$0xff]  ;;  %v31_v17 = vld [vmem:[%s1205_s0 + $0x40] sm:$0xff] }
  0x14   :  { %810 = vmatmul.mubr.msk.f32.vlgmr.msra.gmra.mxu0 %vm70_vm0, %v24_v10  ;;  %v32_v18 = vld [vmem:[%s1205_s0 + $0x48] sm:$0xff]  ;;  %v33_v19 = vld [vmem:[%s1205_s0 + $0x50] sm:$0xff]  ;;  %v34_v20 = vld [vmem:[%s1205_s0 + $0x58] sm:$0xff] }
  0x15   :  { %812 = vmatprep.mubr.msk.f32.mxu0 %vm70_vm0, %v25_v11  ;;  %v35_v21 = vld [vmem:[%s1205_s0 + $0x60] sm:$0xff]  ;;  %v36_v22 = vld [vmem:[%s1205_s0 + $0x68] sm:$0xff]  ;;  %v37_v23 = vld [vmem:[%s1205_s0 + $0x70] sm:$0xff] }
  0x16   :  { %v38_v24 = vld [vmem:[%s1205_s0 + $0x78] sm:$0xff]  ;;  %v39_v25 = vld [vmem:[%s1205_s0 + $0x80] sm:$0xff]  ;;  %v40_v26 = vld [vmem:[%s1205_s0 + $0x88] sm:$0xff] }
  0x17   :  { %v41_v27 = vld [vmem:[%s1205_s0 + $0x90] sm:$0xff]  ;;  %v42_v28 = vld [vmem:[%s1205_s0 + $0x98] sm:$0xff]  ;;  %v43_v29 = vld [vmem:[%s1205_s0 + $0xa0] sm:$0xff] }
  0x18   :  { %813 = vmatmul.mubr.msk.f32.gmra.mxu0 %vm70_vm0, %v26_v12  ;;  %v44_v30 = vld [vmem:[%s1205_s0 + $0xa8] sm:$0xff]  ;;  %v45_v31 = vld [vmem:[%s1205_s0 + $0xb0] sm:$0xff]  ;;  %v46_v32 = vld [vmem:[%s1205_s0 + $0xb8] sm:$0xff] }
  0x19   :  { %815 = vmatprep.mubr.msk.f32.mxu0 %vm70_vm0, %v27_v13  ;;  %v47_v33 = vld [vmem:[%s1205_s0 + $0xc0] sm:$0xff]  ;;  %v48_v34 = vld [vmem:[%s1205_s0 + $0xc8] sm:$0xff]  ;;  %v49_v35 = vld [vmem:[%s1205_s0 + $0xd0] sm:$0xff] }
  0x1a   :  { %v50_v36 = vld [vmem:[%s1205_s0 + $0xd8] sm:$0xff]  ;;  %v51_v37 = vld [vmem:[%s1205_s0 + $0xe0] sm:$0xff]  ;;  %v52_v38 = vld [vmem:[%s1205_s0 + $0xe8] sm:$0xff] }
  0x1b   :  { %v53_v39 = vld [vmem:[%s1205_s0 + $0xf0] sm:$0xff]  ;;  %v54_v40 = vld [vmem:[%s1205_s0 + $0xf8] sm:$0xff]  ;;  %v1082_v41 = vld [vmem:[%s1208_s3] sm:$0x1] }
  0x1c   :  { %816 = vmatmul.mubr.msk.f32.gmra.mxu0 %vm70_vm0, %v28_v14  ;;  %791 = vmatprep.mubr.msk.f32.mxu1 %vm435_vm1, %v1082_v41  ;;  %v425_v43 = vld [vmem:[#allocation2] sm:$0x1] }
  0x1d   :  { %818 = vmatprep.mubr.msk.f32.mxu0 %vm70_vm0, %v29_v15  ;;  %428 = vperm.xlu0 %860, %v425_v43   ;;  %v1119_v10 = vld [vmem:[%s1207_s2] ss:$0 sm:$0xff]  ;;  %s893_s2 = smov [#allocation3]  }
  0x1e   :  { %s645_s21 = sshll.u32 %s893_s2, 4  ;;  %s646_s21 = int_to_ptr.vmem [resolvable:$true] %s645_s21 }
  0x1f   :  { %s869_s22 = scalar_lea.vmem %s646_s21, 32  ;;  %p874_p1 = scmp.lt.s32.totalorder %s646_s21, %s646_s21 }
  0x20   :  { %819 = vmatmul.mubr.msk.f32.gmra.mxu0 %vm70_vm0, %v30_v16  ;;  %p870_p0 = scmp.ne.s32.totalorder %s646_s21, %s869_s22  ;;  %p875_p2 = scmp.lt.s32.totalorder %s869_s22, %s869_s22 }
  0x21   :  { %821 = vmatprep.mubr.msk.f32.mxu0 %vm70_vm0, %v31_v17 }
  0x22   :  { %p876_p3 = por %p875_p2, %p874_p1 }
  0x24   :  { %822 = vmatmul.mubr.msk.f32.gmra.mxu0 %vm70_vm0, %v32_v18  ;;  %p877_p4 = pnand %p876_p3, %p870_p0 }
  0x25   :  { %824 = vmatprep.mubr.msk.f32.mxu0 %vm70_vm0, %v33_v19 }
  0x28   :  { %825 = vmatmul.mubr.msk.f32.gmra.mxu0 %vm70_vm0, %v34_v20 }
  0x29   :  { %827 = vmatprep.mubr.msk.f32.mxu0 %vm70_vm0, %v35_v21 }
  0x2c   :  { %828 = vmatmul.mubr.msk.f32.gmra.mxu0 %vm70_vm0, %v36_v22 }
  0x2d   :  { %830 = vmatprep.mubr.msk.f32.mxu0 %vm70_vm0, %v37_v23 }
  0x30   :  { %831 = vmatmul.mubr.msk.f32.gmra.mxu0 %vm70_vm0, %v38_v24 }
  0x31   :  { %833 = vmatprep.mubr.msk.f32.mxu0 %vm70_vm0, %v39_v25 }
  0x34   :  { %834 = vmatmul.mubr.msk.f32.gmra.mxu0 %vm70_vm0, %v40_v26 }
  0x35   :  { %836 = vmatprep.mubr.msk.f32.mxu0 %vm70_vm0, %v41_v27 }
  0x38   :  { %837 = vmatmul.mubr.msk.f32.gmra.mxu0 %vm70_vm0, %v42_v28 }
  0x39   :  { %839 = vmatprep.mubr.msk.f32.mxu0 %vm70_vm0, %v43_v29 }
  0x3c   :  { %840 = vmatmul.mubr.msk.f32.gmra.mxu0 %vm70_vm0, %v44_v30 }
  0x3d   :  { %842 = vmatprep.mubr.msk.f32.mxu0 %vm70_vm0, %v45_v31 }
  0x40   :  { %843 = vmatmul.mubr.msk.f32.gmra.mxu0 %vm70_vm0, %v46_v32 }
  0x41   :  { %845 = vmatprep.mubr.msk.f32.mxu0 %vm70_vm0, %v47_v33 }
  0x44   :  { %846 = vmatmul.mubr.msk.f32.gmra.mxu0 %vm70_vm0, %v48_v34 }
  0x45   :  { %848 = vmatprep.mubr.msk.f32.mxu0 %vm70_vm0, %v49_v35 }
  0x48   :  { %849 = vmatmul.mubr.msk.f32.gmra.mxu0 %vm70_vm0, %v50_v36 }
  0x49   :  { %851 = vmatprep.mubr.msk.f32.mxu0 %vm70_vm0, %v51_v37 }
  0x4c   :  { %852 = vmatmul.mubr.msk.f32.gmra.mxu0 %vm70_vm0, %v52_v38 }
  0x4d   :  { %854 = vmatprep.mubr.msk.f32.mxu0 %vm70_vm0, %v53_v39 }
  0x50   :  { %855 = vmatmul.mubr.msk.f32.gmra.mxu0 %vm70_vm0, %v54_v40 }
  0xd4   :  { %v1086_v42 = vpop.f32.mrf.mxu0 }
  0xd6   :  { %v1088_v44 = vpop.f32.mrf.mxu0 }
  0xd8   :  { %v1090_v46 = vpop.f32.mrf.mxu0 }
  0xda   :  { %v1092_v47 = vpop.f32.mrf.mxu0 }
  0xdc   :  { %v1094_v48 = vpop.f32.mrf.mxu0 }
  0xde   :  { %v1096_v49 = vpop.f32.mrf.mxu0 }
  0xe0   :  { %v1098_v50 = vpop.f32.mrf.mxu0 }
  0xe2   :  { %v1100_v51 = vpop.f32.mrf.mxu0 }
  0xe4   :  { %v823_v52 = vpop.f32.mrf.mxu0 }
  0xe5   :  { %v279_v37 = vadd.f32 %v823_v52, %v1119_v10  ;;  %v269_v52 = vadd.f32 %v1098_v50, %v1119_v10  ;;  %v259_v50 = vadd.f32 %v1094_v48, %v1119_v10  ;;  %v249_v48 = vadd.f32 %v1090_v46, %v1119_v10 }
  0xe6   :  { %v1102_v53 = vpop.f32.mrf.mxu0  ;;  %v239_v46 = vadd.f32 %v1086_v42, %v1119_v10  ;;  %v431_v42 = vlaneseq }
  0xe7   :  { %v401_v43 = vmax.f32 %v279_v37, 0.0  ;;  %v274_v45 = vadd.f32 %v1119_v10, %v1102_v53  ;;  %v264_v53 = vadd.f32 %v1119_v10, %v1100_v51  ;;  %v397_v51 = vmax.f32 %v259_v50, 0.0 }
  0xe8   :  { %v826_v54 = vpop.f32.mrf.mxu0  ;;  %vm636_vm2 = vcmp.lt.s32.totalorder %v431_v42, 256 }
  0xe9   :  { %v289_v29 = vadd.f32 %v826_v54, %v1119_v10 }
  0xea   :  { %v283_v55 = vpop.f32.mrf.mxu0 }
  0xeb   :  { %v403_v33 = vmax.f32 %v289_v29, 0.0  ;;  %v284_v34 = vadd.f32 %v1119_v10, %v283_v55 }
  0xec   :  { %v829_v56 = vpop.f32.mrf.mxu0 }
  0xed   :  { %v299_v21 = vadd.f32 %v829_v56, %v1119_v10  ;;  %v402_v38 = vmax.f32 %v284_v34, 0.0  ;;  %v400_v56 = vmax.f32 %v274_v45, 0.0 }
  0xee   :  { %v293_v57 = vpop.f32.mrf.mxu0 }
  0xef   :  { %v405_v25 = vmax.f32 %v299_v21, 0.0  ;;  %v294_v26 = vadd.f32 %v1119_v10, %v293_v57 }
  0xf0   :  { %v832_v58 = vpop.f32.mrf.mxu0 }
  0xf1   :  { %v309_v11 = vadd.f32 %v832_v58, %v1119_v10  ;;  %v404_v30 = vmax.f32 %v294_v26, 0.0 }
  0xf2   :  { %v303_v59 = vpop.f32.mrf.mxu0 }
  0xf3   :  { %v407_v17 = vmax.f32 %v309_v11, 0.0  ;;  %v304_v18 = vadd.f32 %v1119_v10, %v303_v59  ;;  %v399_v59 = vmax.f32 %v269_v52, 0.0 }
  0xf4   :  { %v1104_v60 = vpop.f32.mrf.mxu0 }
  0xf5   :  { %v406_v22 = vmax.f32 %v304_v18, 0.0 }
  0xf6   :  { %v1106_v61 = vpop.f32.mrf.mxu0 }
  0xf8   :  { %v1108_v62 = vpop.f32.mrf.mxu0 }
  0xfa   :  { %v1110_v63 = vpop.f32.mrf.mxu0 }
  0xfb   :  { %v324_v11 = vadd.f32 %v1119_v10, %v1110_v63 }
  0xfc   :  { %v1112_v0 = vpop.f32.mrf.mxu0 }
  0xfe   :  { %v1114_v1 = vpop.f32.mrf.mxu0 }
 0x100   :  { %v844_v2 = vpop.f32.mrf.mxu0 }
 0x101   :  { %v349_v54 = vadd.f32 %v844_v2, %v1119_v10  ;;  %v339_v2 = vadd.f32 %v1112_v0, %v1119_v10  ;;  %v254_v0 = vadd.f32 %v1119_v10, %v1096_v49  ;;  %v395_v49 = vmax.f32 %v249_v48, 0.0 }
 0x102   :  { %v343_v3 = vpop.f32.mrf.mxu0 }
 0x103   :  { %v415_v57 = vmax.f32 %v349_v54, 0.0  ;;  %v344_v58 = vadd.f32 %v1119_v10, %v343_v3  ;;  %v398_v3 = vmax.f32 %v264_v53, 0.0 }
 0x104   :  { %v847_v4 = vpop.f32.mrf.mxu0 }
 0x105   :  { %v359_v35 = vadd.f32 %v847_v4, %v1119_v10  ;;  %v414_v4 = vmax.f32 %v344_v58, 0.0 }
 0x106   :  { %v353_v5 = vpop.f32.mrf.mxu0 }
 0x107   :  { %v417_v39 = vmax.f32 %v359_v35, 0.0  ;;  %v354_v40 = vadd.f32 %v1119_v10, %v353_v5  ;;  %v413_v5 = vmax.f32 %v339_v2, 0.0 }
 0x108   :  { %v850_v6 = vpop.f32.mrf.mxu0 }
 0x109   :  { %v369_v27 = vadd.f32 %v850_v6, %v1119_v10  ;;  %v416_v55 = vmax.f32 %v354_v40, 0.0  ;;  %v334_v6 = vadd.f32 %v1119_v10, %v1114_v1  ;;  %v396_v1 = vmax.f32 %v254_v0, 0.0 }
 0x10a   :  { %v363_v7 = vpop.f32.mrf.mxu0 }
 0x10b   :  { %v419_v31 = vmax.f32 %v369_v27, 0.0  ;;  %v364_v32 = vadd.f32 %v1119_v10, %v363_v7  ;;  %v329_v7 = vadd.f32 %v1108_v62, %v1119_v10  ;;  %v244_v62 = vadd.f32 %v1119_v10, %v1092_v47 }
 0x10c   :  { %v853_v8 = vpop.f32.mrf.mxu0  ;;  %v393_v47 = vmax.f32 %v239_v46, 0.0 }
 0x10d   :  { %v379_v19 = vadd.f32 %v853_v8, %v1119_v10  ;;  %v418_v36 = vmax.f32 %v364_v32, 0.0  ;;  %v412_v8 = vmax.f32 %v334_v6, 0.0  ;;  %v394_v63 = vmax.f32 %v244_v62, 0.0 }
 0x10e   :  { %v373_v9 = vpop.f32.mrf.mxu0 }
 0x10f   :  { %v421_v23 = vmax.f32 %v379_v19, 0.0  ;;  %v374_v24 = vadd.f32 %v1119_v10, %v373_v9  ;;  %v411_v9 = vmax.f32 %v329_v7, 0.0  ;;  %v429_v19 = vpop.permute.xlu0 %428 }
 0x110   :  { %v856_v12 = vpop.f32.mrf.mxu0 }
 0x111   :  { %v389_v13 = vadd.f32 %v856_v12, %v1119_v10  ;;  %v420_v28 = vmax.f32 %v374_v24, 0.0  ;;  %v319_v12 = vadd.f32 %v1104_v60, %v1119_v10  ;;  %v234_v60 = vadd.f32 %v1119_v10, %v1088_v44 }
 0x112   :  { %v383_v14 = vpop.f32.mrf.mxu0 }
 0x113   :  { %v423_v15 = vmax.f32 %v389_v13, 0.0  ;;  %v384_v16 = vadd.f32 %v1119_v10, %v383_v14  ;;  %v410_v13 = vmax.f32 %v324_v11, 0.0  ;;  %v409_v14 = vmax.f32 %v319_v12, 0.0 }
 0x115   :  { %v422_v20 = vmax.f32 %v384_v16, 0.0  ;;  %759 = vmatprep.subr.msk.mxu1 %vm435_vm1, %v423_v15  ;;  %v314_v15 = vadd.f32 %v1119_v10, %v1106_v61  ;;  %v432_v61 = vshrl.u32 %v431_v42, 7 }
 0x116   :  { %760 = vmatpush3.xpose.msk.msra.mxu1 %vm435_vm1, %v407_v17  ;;  %v392_v17 = vmax.f32 %v234_v60, 0.0 }
 0x117   :  { %761 = vmatprep.subr.msk.mxu1 %vm435_vm1, %v422_v20  ;;  %v408_v16 = vmax.f32 %v314_v15, 0.0  ;;  %v433_v18 = vsub.s32 0, %v432_v61 }
 0x119   :  { %v434_v20 = vrot.slane %v429_v19, %v433_v18 }
 0x11a   :  { %762 = vmatpush3.xpose.msk.msra.mxu1 %vm435_vm1, %v406_v22 }
 0x11b   :  { %763 = vmatprep.subr.msk.mxu1 %vm435_vm1, %v421_v23 }
 0x11e   :  { %764 = vmatpush3.xpose.msk.msra.mxu1 %vm435_vm1, %v405_v25 }
 0x11f   :  { %765 = vmatprep.subr.msk.mxu1 %vm435_vm1, %v420_v28 }
 0x122   :  { %766 = vmatpush3.xpose.msk.msra.mxu1 %vm435_vm1, %v404_v30 }
 0x123   :  { %767 = vmatprep.subr.msk.mxu1 %vm435_vm1, %v419_v31 }
 0x126   :  { %768 = vmatpush3.xpose.msk.msra.mxu1 %vm435_vm1, %v403_v33 }
 0x127   :  { %769 = vmatprep.subr.msk.mxu1 %vm435_vm1, %v418_v36 }
 0x12a   :  { %770 = vmatpush3.xpose.msk.msra.mxu1 %vm435_vm1, %v402_v38 }
 0x12b   :  { %771 = vmatprep.subr.msk.mxu1 %vm435_vm1, %v417_v39 }
 0x12e   :  { %772 = vmatpush3.xpose.msk.msra.mxu1 %vm435_vm1, %v401_v43 }
 0x12f   :  { %773 = vmatprep.subr.msk.mxu1 %vm435_vm1, %v416_v55 }
 0x132   :  { %774 = vmatpush3.xpose.msk.msra.mxu1 %vm435_vm1, %v400_v56 }
 0x133   :  { %775 = vmatprep.subr.msk.mxu1 %vm435_vm1, %v415_v57 }
 0x136   :  { %776 = vmatpush3.xpose.msk.msra.mxu1 %vm435_vm1, %v399_v59 }
 0x137   :  { %777 = vmatprep.subr.msk.mxu1 %vm435_vm1, %v414_v4 }
 0x13a   :  { %778 = vmatpush3.xpose.msk.msra.mxu1 %vm435_vm1, %v398_v3 }
 0x13b   :  { %779 = vmatprep.subr.msk.mxu1 %vm435_vm1, %v413_v5 }
 0x13e   :  { %780 = vmatpush3.xpose.msk.msra.mxu1 %vm435_vm1, %v397_v51 }
 0x13f   :  { %781 = vmatprep.subr.msk.mxu1 %vm435_vm1, %v412_v8 }
 0x142   :  { %782 = vmatpush3.xpose.msk.msra.mxu1 %vm435_vm1, %v396_v1 }
 0x143   :  { %783 = vmatprep.subr.msk.mxu1 %vm435_vm1, %v411_v9 }
 0x146   :  { %784 = vmatpush3.xpose.msk.msra.mxu1 %vm435_vm1, %v395_v49 }
 0x147   :  { %785 = vmatprep.subr.msk.mxu1 %vm435_vm1, %v410_v13 }
 0x14a   :  { %786 = vmatpush3.xpose.msk.msra.mxu1 %vm435_vm1, %v394_v63 }
 0x14b   :  { %787 = vmatprep.subr.msk.mxu1 %vm435_vm1, %v409_v14 }
 0x14e   :  { %788 = vmatpush3.xpose.msk.msra.mxu1 %vm435_vm1, %v393_v47 }
 0x14f   :  { %789 = vmatprep.subr.msk.mxu1 %vm435_vm1, %v408_v16 }
 0x152   :  { %790 = vmatpush3.xpose.msk.msra.mxu1 %vm435_vm1, %v392_v17 }
 0x155   :  { %792 = vmatmul.mubr.msk.f32.vlgmr.msra.gmra.mxu1 %vm435_vm1, %v1082_v41  ;;  %v892_v41 = vmov 1966171168  }
 0x156   :  { %v620_v31 = vunpack.c.l.s4 %v892_v41 }
 0x158   :  { %v621_v32 = vunpack.c.0.s8 %v620_v31 }
 0x15a   :  { %v624_v34 = vsub.s32 %v621_v32, %v432_v61 }
 0x215   :  { %v601_v21 = vpop.f32.mrf.mxu1 }
 0x216   :  { %v602_v22 = vadd.f32 %v601_v21, %v434_v20 }
 0x217   :  { %v603_v23 = vpop.f32.mrf.mxu1 }
 0x218   :  { %v606_v44 = vsub.f32 0.0, %v602_v22  ;;  %v604_v10 = vadd.f32 %v603_v23, %v434_v20 }
 0x21a   :  { %v608_v24 = vmul.f32 1.442695, %v606_v44  ;;  %v607_v25 = vsub.f32 0.0, %v604_v10 }
 0x21c   :  { %861 = vpow2.f32 %v608_v24  ;;  %v610_v26 = vmul.f32 1.442695, %v607_v25 }
 0x21e   :  { %863 = vpow2.f32 %v610_v26 }
 0x229   :  { %v862_v27 = vpop.eup %861 }
 0x22a   :  { %v612_v28 = vadd.f32 1.0, %v862_v27 }
 0x22b   :  { %v864_v29 = vpop.eup %863 }
 0x22c   :  { %v613_v30 = vadd.f32 1.0, %v864_v29  ;;  %865 = vrcp.f32 %v612_v28 }
 0x22e   :  { %867 = vrcp.f32 %v613_v30 }
 0x239   :  { %v866_v33 = vpop.eup %865 }
 0x23b   :  { %v868_v35 = vpop.eup %867 }
 0x23c   :  { %v618_v36 = vcombine.low %v866_v33, %v868_v35 }
 0x23e   :  { %v625_v37 = vrot.slane %v618_v36, %v624_v34 }
 0x240   :  { %v632_v38 = vrot.slane %v625_v37, %v624_v34 }
 0x242   :  { %638 = vst.msk [vmem:[#allocation3] sm:$0x3] %vm636_vm2, %v632_v38 }
 0x243   :  { %880 = shalt.err (!%p877_p4)
}
 0x244   :  { %648 = dma.vmem_to_hbm [thread:$0]  %s646_s21, 32, %s1210_s5, [#allocation4]  }
 0x245   :  { %889 = dma.done.wait [#allocation4], 32  }
 0x246   :  { %890 = vsyncadd [#allocation4], 4294967264 }
 0x247   :  { %652 = vsyncpa [#allocation4], 1 }

</bundles_post_ra>
